<compile_context>
chip_gen: v5e
topology: v5e:2x2
jax: 0.10.0
libtpu: 0.0.40
codegen_flags: <defaults>
</compile_context>

<pallas_src>
import jax
import jax.numpy as jnp
from jax.experimental import pallas as pl
from jax.experimental.pallas import tpu as pltpu

# ---- model hyperparameters (small, consistent with the module) -------------
DIM = 32          # embedding dim
HEADS = 2         # number of heads
DIM_HEAD = 16     # per-head dim
INNER = HEADS * DIM_HEAD          # 32
SCALE = DIM_HEAD ** -0.5
LN_EPS = 1e-5
B, N = 2, 8       # batch, sequence length
# dropout = 0.0 -> identity at inference, nothing to do in the kernel.


def self_attention(x, ln_w, ln_b, wqkv_t, wout_t, bout):
    """x: (B, N, D); ln_w/ln_b: (1, D); wqkv_t: (D, 3*INNER); wout_t:
    (INNER, D); bout: (1, D).  All parameter folding / casting happens once
    here, outside the kernel."""
    b, n, d = x.shape
    bn = b * n

    # Fold LayerNorm affine into the QKV projection (to_qkv has no own bias):
    #   (xhat*g + s) @ W == xhat @ (g[:,None]*W) + s @ W
    wqkv_eff = (ln_w.reshape(d, 1) * wqkv_t).astype(jnp.bfloat16)   # (D, 3*INNER)
    bqkv = ln_b @ wqkv_t                                            # (1, 3*INNER) f32

    bq = bqkv[:, 0 * INNER:1 * INNER]                               # Q bias: kept (added in-kernel)
    # K bias dropped: softmax(q·(k+bk)) == softmax(q·k) (per-row constant shift).
    bv = bqkv[:, 2 * INNER:3 * INNER]                               # V bias folded into output bias:
    bout_eff = bout + bv @ wout_t                                   # attn rows sum to 1 (exact recip).

    wout_bf = wout_t.astype(jnp.bfloat16)                           # (INNER, D)

    x2 = x.reshape(bn, d)                                           # leading-axis merge (free)

    def kernel(x_ref, wqkv_ref, bq_ref, wout_ref, bout_ref, o_ref):
        xf = x_ref[...].astype(jnp.float32)                         # (BN, D)

        # ---- LayerNorm statistics (affine already folded into the weights) -
        mean = jnp.mean(xf, axis=-1, keepdims=True)
        var = jnp.mean((xf - mean) ** 2, axis=-1, keepdims=True)
        xhat = (xf - mean) * jax.lax.rsqrt(var + LN_EPS)            # (BN, D) f32

        # ---- fused QKV projection: one bf16 MXU pass over 96 output lanes --
        qkv = jnp.dot(xhat.astype(jnp.bfloat16), wqkv_ref[...],
                      preferred_element_type=jnp.float32)           # (BN, 3*INNER) f32

        q_all = qkv[:, 0 * INNER:1 * INNER] + bq_ref[...]           # (BN, INNER)
        k_all = qkv[:, 1 * INNER:2 * INNER]                         # K bias dropped
        v_all = qkv[:, 2 * INNER:3 * INNER]                         # V bias folded into bout

        # (BN, INNER) -> (H*B, N, dh): 16-lane head slices + leading-axis stack.
        def to_heads(t):
            return jnp.stack(
                [t[:, h * DIM_HEAD:(h + 1) * DIM_HEAD].reshape(b, n, DIM_HEAD)
                 for h in range(HEADS)], axis=0).reshape(HEADS * b, n, DIM_HEAD)

        q3 = to_heads(q_all).astype(jnp.bfloat16)
        k3 = to_heads(k_all).astype(jnp.bfloat16)
        v3 = to_heads(v_all).astype(jnp.bfloat16)

        # ---- attention, batched over batch*heads ----------------------------
        s = jnp.einsum("bnd,bmd->bnm", q3, k3,
                       preferred_element_type=jnp.float32) * SCALE  # (H*B, N, N) f32
        s = s - jnp.max(s, axis=-1, keepdims=True)
        p = jnp.exp(s)
        attn = p / jnp.sum(p, axis=-1, keepdims=True)               # exact reciprocal

        o_h = jnp.einsum("bnm,bmd->bnd", attn.astype(jnp.bfloat16), v3,
                         preferred_element_type=jnp.float32)        # (H*B, N, dh) f32

        # ---- merge heads (lane concat) + single output projection ----------
        o_heads = o_h.reshape(HEADS, b, n, DIM_HEAD)
        o_cat = jnp.concatenate(
            [o_heads[h].reshape(bn, DIM_HEAD) for h in range(HEADS)],
            axis=-1)                                                 # (BN, INNER)

        y = jnp.dot(o_cat.astype(jnp.bfloat16), wout_ref[...],
                    preferred_element_type=jnp.float32) + bout_ref[...]
        o_ref[...] = y.astype(o_ref.dtype)                           # (BN, D)

    grid_spec = pltpu.PrefetchScalarGridSpec(
        num_scalar_prefetch=0,
        grid=(1,),                     # single step: all B*N rows handled at once
        in_specs=[
            pl.BlockSpec((bn, d), lambda i: (0, 0)),               # x (flattened)
            pl.BlockSpec((d, 3 * INNER), lambda i: (0, 0)),        # folded Wqkv (bf16)
            pl.BlockSpec((1, INNER), lambda i: (0, 0)),            # Q bias (f32)
            pl.BlockSpec((INNER, d), lambda i: (0, 0)),            # Wout (bf16)
            pl.BlockSpec((1, d), lambda i: (0, 0)),                # folded out bias (f32)
        ],
        out_specs=pl.BlockSpec((bn, d), lambda i: (0, 0)),
    )

    out2 = pl.pallas_call(
        kernel,
        out_shape=jax.ShapeDtypeStruct((bn, d), x.dtype),
        grid_spec=grid_spec,
        compiler_params=pltpu.CompilerParams(
            dimension_semantics=("arbitrary",)),
    )(x2, wqkv_eff, bq, wout_bf, bout_eff)

    return out2.reshape(b, n, d)                                    # leading-axis split (free)


def reference(x, ln_w, ln_b, wqkv_t, wout_t, bout):
    mean = jnp.mean(x, axis=-1, keepdims=True)
    var = jnp.mean((x - mean) ** 2, axis=-1, keepdims=True)
    xn = (x - mean) / jnp.sqrt(var + LN_EPS) * ln_w[0] + ln_b[0]
    qkv = xn @ wqkv_t                                        # (B, N, 3*INNER)
    q, k, v = jnp.split(qkv, 3, axis=-1)

    def split_heads(t):  # (B, N, H*dh) -> (B, H, N, dh)
        return t.reshape(B, N, HEADS, DIM_HEAD).transpose(0, 2, 1, 3)

    q, k, v = map(split_heads, (q, k, v))
    dots = jnp.einsum("bhnd,bhmd->bhnm", q, k) * SCALE
    attn = jax.nn.softmax(dots, axis=-1)
    out = jnp.einsum("bhnm,bhmd->bhnd", attn, v)
    out = out.transpose(0, 2, 1, 3).reshape(B, N, INNER)
    return out @ wout_t + bout[0]


if __name__ == "__main__":
    key = jax.random.PRNGKey(0)
    kx, k1, k2, k3, k4, k5 = jax.random.split(key, 6)

    x = jax.random.normal(kx, (B, N, DIM), dtype=jnp.float32)

    # Deterministic synthetic parameters (shapes match the PyTorch __init__).
    ln_w = 1.0 + 0.01 * jax.random.normal(k1, (1, DIM), dtype=jnp.float32)
    ln_b = 0.01 * jax.random.normal(k2, (1, DIM), dtype=jnp.float32)
    # torch Linear weights are (out, in); we pass their transpose (in, out).
    wqkv_t = 0.05 * jax.random.normal(k3, (DIM, 3 * INNER), dtype=jnp.float32)
    wout_t = 0.05 * jax.random.normal(k4, (INNER, DIM), dtype=jnp.float32)
    bout = 0.01 * jax.random.normal(k5, (1, DIM), dtype=jnp.float32)

    y = self_attention(x, ln_w, ln_b, wqkv_t, wout_t, bout)
    y = jax.block_until_ready(y)

    y_ref = reference(x, ln_w, ln_b, wqkv_t, wout_t, bout)
    assert y.shape == (B, N, DIM)
    # Tolerance sized for bf16 MXU operands (weights/activations cast to bf16;
    # LN stats and softmax normalization kept in f32 with exact reciprocal).
    assert jnp.allclose(y, y_ref, atol=1e-2, rtol=1e-2), "mismatch vs reference"

    print("KERNEL_OK")
</pallas_src>

<mosaic_0001>
module attributes {stable_mosaic.version = 11 : i64} {
  func.func @kernel(%arg0: i32, %arg1: memref<16x32xf32, #tpu.memory_space<vmem>>, %arg2: memref<32x96xbf16, #tpu.memory_space<vmem>>, %arg3: memref<1x32xf32, #tpu.memory_space<vmem>>, %arg4: memref<32x32xbf16, #tpu.memory_space<vmem>>, %arg5: memref<1x32xf32, #tpu.memory_space<vmem>>, %arg6: memref<16x32xf32, #tpu.memory_space<vmem>>) attributes {dimension_semantics = [#tpu.dimension_semantics<arbitrary>], iteration_bounds = array<i64: 1>, scalar_prefetch = 0 : i64, scratch_operands = 0 : i64, tpu.core_type = #tpu.core_type<tc>, window_params = [{pipeline_mode = #tpu.pipeline_mode<synchronous>, transform_indices = @transform_0, window_bounds = array<i64: 16, 32>}, {pipeline_mode = #tpu.pipeline_mode<synchronous>, transform_indices = @transform_1, window_bounds = array<i64: 32, 96>}, {pipeline_mode = #tpu.pipeline_mode<synchronous>, transform_indices = @transform_2, window_bounds = array<i64: 1, 32>}, {pipeline_mode = #tpu.pipeline_mode<synchronous>, transform_indices = @transform_3, window_bounds = array<i64: 32, 32>}, {pipeline_mode = #tpu.pipeline_mode<synchronous>, transform_indices = @transform_4, window_bounds = array<i64: 1, 32>}, {pipeline_mode = #tpu.pipeline_mode<synchronous>, transform_indices = @transform_5, window_bounds = array<i64: 16, 32>}]} {
    %c0 = arith.constant 0 : index
    %c0_0 = arith.constant 0 : index
    %0 = vector.load %arg1[%c0, %c0_0] : memref<16x32xf32, #tpu.memory_space<vmem>>, vector<16x32xf32>
    %cst = arith.constant dense<0.000000e+00> : vector<16xf32>
    %1 = vector.multi_reduction <add>, %0, %cst [1] : vector<16x32xf32> to vector<16xf32>
    %2 = vector.shape_cast %1 : vector<16xf32> to vector<16x1xf32>
    %cst_1 = arith.constant 3.200000e+01 : f32
    %3 = vector.broadcast %cst_1 : f32 to vector<16x1xf32>
    %4 = arith.divf %2, %3 : vector<16x1xf32>
    %5 = vector.broadcast %4 : vector<16x1xf32> to vector<16x32xf32>
    %6 = arith.subf %0, %5 : vector<16x32xf32>
    %7 = arith.mulf %6, %6 : vector<16x32xf32>
    %cst_2 = arith.constant dense<0.000000e+00> : vector<16xf32>
    %8 = vector.multi_reduction <add>, %7, %cst_2 [1] : vector<16x32xf32> to vector<16xf32>
    %9 = vector.shape_cast %8 : vector<16xf32> to vector<16x1xf32>
    %cst_3 = arith.constant 3.200000e+01 : f32
    %10 = vector.broadcast %cst_3 : f32 to vector<16x1xf32>
    %11 = arith.divf %9, %10 : vector<16x1xf32>
    %12 = vector.broadcast %4 : vector<16x1xf32> to vector<16x32xf32>
    %13 = arith.subf %0, %12 : vector<16x32xf32>
    %cst_4 = arith.constant 9.99999974E-6 : f32
    %14 = vector.broadcast %cst_4 : f32 to vector<16x1xf32>
    %15 = arith.addf %11, %14 : vector<16x1xf32>
    %16 = math.rsqrt %15 : vector<16x1xf32>
    %17 = vector.broadcast %16 : vector<16x1xf32> to vector<16x32xf32>
    %18 = arith.mulf %13, %17 : vector<16x32xf32>
    %19 = arith.truncf %18 : vector<16x32xf32> to vector<16x32xbf16>
    %c0_5 = arith.constant 0 : index
    %c0_6 = arith.constant 0 : index
    %20 = vector.load %arg2[%c0_5, %c0_6] : memref<32x96xbf16, #tpu.memory_space<vmem>>, vector<32x96xbf16>
    %cst_7 = arith.constant dense<0.000000e+00> : vector<16x96xf32>
    %21 = tpu.matmul %19, %20, %cst_7 {dimension_numbers = #tpu.dot_dimension_numbers<[1], [0], [0], [1], [0, 0, 1, 1], [], []>} : vector<16x32xbf16>, vector<32x96xbf16>, vector<16x96xf32> -> vector<16x96xf32>
    %22 = vector.extract_strided_slice %21 {offsets = [0, 0], sizes = [16, 32], strides = [1, 1]} : vector<16x96xf32> to vector<16x32xf32>
    %c0_8 = arith.constant 0 : index
    %c0_9 = arith.constant 0 : index
    %23 = vector.load %arg3[%c0_8, %c0_9] : memref<1x32xf32, #tpu.memory_space<vmem>>, vector<1x32xf32>
    %24 = vector.broadcast %23 : vector<1x32xf32> to vector<16x32xf32>
    %25 = arith.addf %22, %24 : vector<16x32xf32>
    %26 = vector.extract_strided_slice %21 {offsets = [0, 32], sizes = [16, 32], strides = [1, 1]} : vector<16x96xf32> to vector<16x32xf32>
    %27 = vector.extract_strided_slice %21 {offsets = [0, 64], sizes = [16, 32], strides = [1, 1]} : vector<16x96xf32> to vector<16x32xf32>
    %28 = vector.extract_strided_slice %25 {offsets = [0, 0], sizes = [16, 16], strides = [1, 1]} : vector<16x32xf32> to vector<16x16xf32>
    %29 = vector.shape_cast %28 : vector<16x16xf32> to vector<2x8x16xf32>
    %30 = vector.extract_strided_slice %25 {offsets = [0, 16], sizes = [16, 16], strides = [1, 1]} : vector<16x32xf32> to vector<16x16xf32>
    %31 = vector.shape_cast %30 : vector<16x16xf32> to vector<2x8x16xf32>
    %32 = vector.shape_cast %29 : vector<2x8x16xf32> to vector<1x2x8x16xf32>
    %33 = vector.shape_cast %31 : vector<2x8x16xf32> to vector<1x2x8x16xf32>
    %34 = tpu.concatenate %32, %33 in 0 : vector<1x2x8x16xf32>, vector<1x2x8x16xf32> -> vector<2x2x8x16xf32>
    %35 = vector.shape_cast %34 : vector<2x2x8x16xf32> to vector<4x8x16xf32>
    %36 = arith.truncf %35 : vector<4x8x16xf32> to vector<4x8x16xbf16>
    %37 = vector.extract_strided_slice %26 {offsets = [0, 0], sizes = [16, 16], strides = [1, 1]} : vector<16x32xf32> to vector<16x16xf32>
    %38 = vector.shape_cast %37 : vector<16x16xf32> to vector<2x8x16xf32>
    %39 = vector.extract_strided_slice %26 {offsets = [0, 16], sizes = [16, 16], strides = [1, 1]} : vector<16x32xf32> to vector<16x16xf32>
    %40 = vector.shape_cast %39 : vector<16x16xf32> to vector<2x8x16xf32>
    %41 = vector.shape_cast %38 : vector<2x8x16xf32> to vector<1x2x8x16xf32>
    %42 = vector.shape_cast %40 : vector<2x8x16xf32> to vector<1x2x8x16xf32>
    %43 = tpu.concatenate %41, %42 in 0 : vector<1x2x8x16xf32>, vector<1x2x8x16xf32> -> vector<2x2x8x16xf32>
    %44 = vector.shape_cast %43 : vector<2x2x8x16xf32> to vector<4x8x16xf32>
    %45 = arith.truncf %44 : vector<4x8x16xf32> to vector<4x8x16xbf16>
    %46 = vector.extract_strided_slice %27 {offsets = [0, 0], sizes = [16, 16], strides = [1, 1]} : vector<16x32xf32> to vector<16x16xf32>
    %47 = vector.shape_cast %46 : vector<16x16xf32> to vector<2x8x16xf32>
    %48 = vector.extract_strided_slice %27 {offsets = [0, 16], sizes = [16, 16], strides = [1, 1]} : vector<16x32xf32> to vector<16x16xf32>
    %49 = vector.shape_cast %48 : vector<16x16xf32> to vector<2x8x16xf32>
    %50 = vector.shape_cast %47 : vector<2x8x16xf32> to vector<1x2x8x16xf32>
    %51 = vector.shape_cast %49 : vector<2x8x16xf32> to vector<1x2x8x16xf32>
    %52 = tpu.concatenate %50, %51 in 0 : vector<1x2x8x16xf32>, vector<1x2x8x16xf32> -> vector<2x2x8x16xf32>
    %53 = vector.shape_cast %52 : vector<2x2x8x16xf32> to vector<4x8x16xf32>
    %54 = arith.truncf %53 : vector<4x8x16xf32> to vector<4x8x16xbf16>
    "tpu.trace_start"() <{level = 10 : i32, message = "bnd,bmd->bnm"}> : () -> ()
    %cst_10 = arith.constant dense<0.000000e+00> : vector<4x8x8xf32>
    %55 = tpu.matmul %36, %45, %cst_10 {dimension_numbers = #tpu.dot_dimension_numbers<[2], [2], [1], [1], [0, 0, 0, 1, 1, 1], [0], [0]>} : vector<4x8x16xbf16>, vector<4x8x16xbf16>, vector<4x8x8xf32> -> vector<4x8x8xf32>
    "tpu.trace_stop"() : () -> ()
    %cst_11 = arith.constant 2.500000e-01 : f32
    %56 = vector.broadcast %cst_11 : f32 to vector<4x8x8xf32>
    %57 = arith.mulf %55, %56 : vector<4x8x8xf32>
    %cst_12 = arith.constant dense<0xFF800000> : vector<4x8xf32>
    %58 = vector.multi_reduction <maximumf>, %57, %cst_12 [2] : vector<4x8x8xf32> to vector<4x8xf32>
    %59 = vector.shape_cast %58 : vector<4x8xf32> to vector<4x8x1xf32>
    %60 = vector.broadcast %59 : vector<4x8x1xf32> to vector<4x8x8xf32>
    %61 = arith.subf %57, %60 : vector<4x8x8xf32>
    %62 = math.exp %61 : vector<4x8x8xf32>
    %cst_13 = arith.constant dense<0.000000e+00> : vector<4x8xf32>
    %63 = vector.multi_reduction <add>, %62, %cst_13 [2] : vector<4x8x8xf32> to vector<4x8xf32>
    %64 = vector.shape_cast %63 : vector<4x8xf32> to vector<4x8x1xf32>
    %65 = vector.broadcast %64 : vector<4x8x1xf32> to vector<4x8x8xf32>
    %66 = arith.divf %62, %65 : vector<4x8x8xf32>
    %67 = arith.truncf %66 : vector<4x8x8xf32> to vector<4x8x8xbf16>
    "tpu.trace_start"() <{level = 10 : i32, message = "bnm,bmd->bnd"}> : () -> ()
    %cst_14 = arith.constant dense<0.000000e+00> : vector<4x8x16xf32>
    %68 = tpu.matmul %67, %54, %cst_14 {dimension_numbers = #tpu.dot_dimension_numbers<[2], [1], [1], [2], [0, 0, 0, 1, 1, 2], [0], [0]>} : vector<4x8x8xbf16>, vector<4x8x16xbf16>, vector<4x8x16xf32> -> vector<4x8x16xf32>
    "tpu.trace_stop"() : () -> ()
    %69 = vector.shape_cast %68 : vector<4x8x16xf32> to vector<2x2x8x16xf32>
    %70 = vector.extract_strided_slice %69 {offsets = [0, 0, 0, 0], sizes = [1, 2, 8, 16], strides = [1, 1, 1, 1]} : vector<2x2x8x16xf32> to vector<1x2x8x16xf32>
    %71 = vector.shape_cast %70 : vector<1x2x8x16xf32> to vector<2x8x16xf32>
    %72 = vector.shape_cast %71 : vector<2x8x16xf32> to vector<16x16xf32>
    %73 = vector.extract_strided_slice %69 {offsets = [1, 0, 0, 0], sizes = [1, 2, 8, 16], strides = [1, 1, 1, 1]} : vector<2x2x8x16xf32> to vector<1x2x8x16xf32>
    %74 = vector.shape_cast %73 : vector<1x2x8x16xf32> to vector<2x8x16xf32>
    %75 = vector.shape_cast %74 : vector<2x8x16xf32> to vector<16x16xf32>
    %76 = tpu.concatenate %72, %75 in 1 : vector<16x16xf32>, vector<16x16xf32> -> vector<16x32xf32>
    %77 = arith.truncf %76 : vector<16x32xf32> to vector<16x32xbf16>
    %c0_15 = arith.constant 0 : index
    %c0_16 = arith.constant 0 : index
    %78 = vector.load %arg4[%c0_15, %c0_16] : memref<32x32xbf16, #tpu.memory_space<vmem>>, vector<32x32xbf16>
    %cst_17 = arith.constant dense<0.000000e+00> : vector<16x32xf32>
    %79 = tpu.matmul %77, %78, %cst_17 {dimension_numbers = #tpu.dot_dimension_numbers<[1], [0], [0], [1], [0, 0, 1, 1], [], []>} : vector<16x32xbf16>, vector<32x32xbf16>, vector<16x32xf32> -> vector<16x32xf32>
    %c0_18 = arith.constant 0 : index
    %c0_19 = arith.constant 0 : index
    %80 = vector.load %arg5[%c0_18, %c0_19] : memref<1x32xf32, #tpu.memory_space<vmem>>, vector<1x32xf32>
    %81 = vector.broadcast %80 : vector<1x32xf32> to vector<16x32xf32>
    %82 = arith.addf %79, %81 : vector<16x32xf32>
    %c0_20 = arith.constant 0 : index
    %c0_21 = arith.constant 0 : index
    %83 = vector.load %arg6[%c0_20, %c0_21] : memref<16x32xf32, #tpu.memory_space<vmem>>, vector<16x32xf32>
    tpu.vector_store %arg6[%c0_20, %c0_21], %82 {strides = array<i32>} : memref<16x32xf32, #tpu.memory_space<vmem>>, vector<16x32xf32>,
    return
  }
  func.func @transform_0(%arg0: i32) -> (i32, i32) {
    %c0_i32 = arith.constant 0 : i32
    %c0_i32_0 = arith.constant 0 : i32
    %c0_i32_1 = arith.constant 0 : i32
    return %c0_i32, %c0_i32_0 : i32, i32
  }
  func.func @transform_1(%arg0: i32) -> (i32, i32) {
    %c0_i32 = arith.constant 0 : i32
    %c0_i32_0 = arith.constant 0 : i32
    %c0_i32_1 = arith.constant 0 : i32
    return %c0_i32, %c0_i32_0 : i32, i32
  }
  func.func @transform_2(%arg0: i32) -> (i32, i32) {
    %c0_i32 = arith.constant 0 : i32
    %c0_i32_0 = arith.constant 0 : i32
    %c0_i32_1 = arith.constant 0 : i32
    return %c0_i32, %c0_i32_0 : i32, i32
  }
  func.func @transform_3(%arg0: i32) -> (i32, i32) {
    %c0_i32 = arith.constant 0 : i32
    %c0_i32_0 = arith.constant 0 : i32
    %c0_i32_1 = arith.constant 0 : i32
    return %c0_i32, %c0_i32_0 : i32, i32
  }
  func.func @transform_4(%arg0: i32) -> (i32, i32) {
    %c0_i32 = arith.constant 0 : i32
    %c0_i32_0 = arith.constant 0 : i32
    %c0_i32_1 = arith.constant 0 : i32
    return %c0_i32, %c0_i32_0 : i32, i32
  }
  func.func @transform_5(%arg0: i32) -> (i32, i32) {
    %c0_i32 = arith.constant 0 : i32
    %c0_i32_0 = arith.constant 0 : i32
    %c0_i32_1 = arith.constant 0 : i32
    return %c0_i32, %c0_i32_0 : i32, i32
  }
}

</mosaic_0001>

<bundles_post_ra>
// kernel: tpu_custom_call.1
= control target key start
LH: loop header
LB: loop body
LE: loop exit
PB: predicated region body
PF: predicated region fallthrough
CT: control target
= control target key end

     0   :  { %10 = vsyncpa [#allocation3], 0  ;;  %s861_s0 = inlined_call_operand.hbm [shape: f32[16,32], index: 0, kind: input, shape index: {}]   ;;  %s862_s1 = inlined_call_operand.hbm [shape: bf16[32,96], index: 1, kind: input, shape index: {}]   ;;  %s863_s2 = inlined_call_operand.vmem [shape: f32[1,32], index: 2, kind: input, shape index: {}]   ;;  %s864_s3 = inlined_call_operand.hbm [shape: bf16[32,32], index: 3, kind: input, shape index: {}]   ;;  %s865_s4 = inlined_call_operand.vmem [shape: f32[1,32], index: 4, kind: input, shape index: {}]   ;;  %s866_s5 = inlined_call_operand.hbm [shape: f32[16,32], index: 5, kind: output, shape index: {}]  }
   0x1   :  { %11 = vsyncpa [#allocation6], 0  ;;  %s30_s20 = sshll.u32 %s862_s1, 4  ;;  %s31_s20 = int_to_ptr.hbm [resolvable:$true] %s30_s20 }
   0x2   :  { %12 = vsyncpa [#allocation4], 0  ;;  %s717_s21 = smov [#allocation5]   ;;  %s17_s25 = sshll.u32 %s861_s0, 4  ;;  %s18_s25 = int_to_ptr.hbm [resolvable:$true] %s17_s25 }
   0x3   :  { %s32_s22 = sshll.u32 %s717_s21, 4  ;;  %s718_s26 = smov 64   ;;  %s33_s22 = int_to_ptr.vmem [resolvable:$true] %s32_s22 }
   0x4   :  { %s719_s27 = smov 4   ;;  %s720_s28 = smov [#allocation2]  }
   0x5   :  { %38 = dma.hbm_to_vmem [thread:$0]  %s31_s20, 256, %s33_s22, [#allocation6], %s718_s26, %s718_s26, %s719_s27  }
   0x6   :  { %s19_s29 = sshll.u32 %s720_s28, 4  ;;  %s721_s30 = smov 128   ;;  %s20_s29 = int_to_ptr.vmem [resolvable:$true] %s19_s29 }
   0x7   :  { %s722_s1 = smov 8   ;;  %s45_s8 = sshll.u32 %s864_s3, 4  ;;  %s46_s8 = int_to_ptr.hbm [resolvable:$true] %s45_s8 }
   0x8   :  { %25 = dma.hbm_to_vmem [thread:$0]  %s18_s25, 256, %s20_s29, [#allocation3], %s721_s30, %s721_s30, %s722_s1  }
   0x9   :  { %s723_s0 = smov [#allocation7]  }
   0xa   :  { %s47_s9 = sshll.u32 %s723_s0, 4  ;;  %s48_s9 = int_to_ptr.vmem [resolvable:$true] %s47_s9 }
   0xb   :  { %53 = dma.hbm_to_vmem [thread:$0]  %s46_s8, 256, %s48_s9, [#allocation6], %s718_s26, %s718_s26, %s719_s27  }
   0xc   :  { %711 = dma.done.wait [#allocation3], 256  }
   0xd   :  { %712 = vsyncadd [#allocation3], 4294967040 }
   0xe   :  { %713 = dma.done.wait [#allocation6], 512  }
   0xf   :  { %714 = vsyncadd [#allocation6], 4294966784  ;;  %vm71_vm0 = vcmask 261120   ;;  %v69_v0 = vld [vmem:[#allocation2] sm:$0xff]  ;;  %v70_v2 = vld [vmem:[#allocation2 + $0x8] sm:$0xff]  ;;  %v724_v4 = vmov 32.0  }
  0x10   :  { %v72_v1 = vsel %vm71_vm0, %v69_v0, 0.0  ;;  %v75_v3 = vsel %vm71_vm0, %v70_v2, 0.0  ;;  %593 = vrcp.f32 %v724_v4  ;;  %v571_v21 = vld [vmem:[#allocation5 + $0x8] sm:$0xff]  ;;  %v570_v22 = vld [vmem:[#allocation5] sm:$0xff]  ;;  %v591_v46 = vld [vmem:[%s863_s2] ss:$0 sm:$0xff] }
  0x11   :  { %73 = vadd.xlane.f32.xlu0 %v72_v1  ;;  %149 = vmatpush.bf16.msra.mxu0 %v571_v21  ;;  %s725_s11 = smov 112   ;;  %s726_s12 = smov 96   ;;  %vm192_vm8 = vcmask 130048   ;;  %vm288_vm9 = vcmask 64512   ;;  %vm394_vm10 = vcmask 1043456  }
  0x12   :  { %s727_s2 = smov 16   ;;  %s728_s15 = smov [#allocation8]  }
  0x13   :  { %s528_s16 = sshll.u32 %s728_s15, 4  ;;  %s530_s19 = sshll.u32 %s866_s5, 4  ;;  %s529_s16 = int_to_ptr.vmem [resolvable:$true] %s528_s16  ;;  %s531_s19 = int_to_ptr.hbm [resolvable:$true] %s530_s19 }
  0x15   :  { %150 = vmatpush.bf16.msra.mxu0 %v570_v22 }
  0x16   :  { %v594_v5 = vpop.eup %593 }
  0x17   :  { %v79_v6 = vmul.f32 32.0, %v594_v5  ;;  %vm83_vm1 = vweird.f32 %v594_v5 }
  0x19   :  { %76 = vadd.xlane.f32.xlu0 %v75_v3  ;;  %v80_v7 = vsub.f32 1.0, %v79_v6 }
  0x1b   :  { %v81_v8 = vmul.f32 %v594_v5, %v80_v7 }
  0x1d   :  { %v82_v9 = vadd.f32 %v594_v5, %v81_v8 }
  0x1f   :  { %v84_v10 = vsel %vm83_vm1, %v594_v5, %v82_v9 }
  0x84   :  { %v74_v11 = vpop.xlane.xlu0 %73 }
  0x85   :  { %v85_v12 = vmul.f32 %v84_v10, %v74_v11 }
  0x87   :  { %v87_v13 = vsub.f32 %v69_v0, %v85_v12 }
  0x89   :  { %v89_v14 = vmul.f32 %v87_v13, %v87_v13 }
  0x8b   :  { %v91_v15 = vsel %vm71_vm0, %v89_v14, 0.0 }
  0x8c   :  { %92 = vadd.xlane.f32.xlu1 %v91_v15  ;;  %v77_v16 = vpop.xlane.xlu0 %76 }
  0x8d   :  { %v86_v17 = vmul.f32 %v84_v10, %v77_v16 }
  0x8f   :  { %v88_v18 = vsub.f32 %v70_v2, %v86_v17 }
  0x91   :  { %v90_v19 = vmul.f32 %v88_v18, %v88_v18 }
  0x93   :  { %v94_v20 = vsel %vm71_vm0, %v90_v19, 0.0 }
  0x94   :  { %95 = vadd.xlane.f32.xlu1 %v94_v20 }
  0xff   :  { %v93_v23 = vpop.xlane.xlu1 %92 }
 0x100   :  { %v97_v24 = vmul.f32 %v93_v23, %v84_v10 }
 0x102   :  { %v99_v25 = vadd.f32 1e-05, %v97_v24 }
 0x104   :  { %595 = vrsqrt.f32 %v99_v25  ;;  %vm107_vm3 = vweird.f32 %v99_v25 }
 0x107   :  { %v96_v26 = vpop.xlane.xlu1 %95 }
 0x108   :  { %v98_v27 = vmul.f32 %v96_v26, %v84_v10 }
 0x10a   :  { %v596_v28 = vpop.eup %595  ;;  %v100_v29 = vadd.f32 1e-05, %v98_v27 }
 0x10b   :  { %v102_v30 = vmul.f32 %v596_v28, %v99_v25  ;;  %vm108_vm2 = vweird.f32 %v596_v28 }
 0x10c   :  { %597 = vrsqrt.f32 %v100_v29  ;;  %vm109_vm5 = vmor %vm107_vm3, %vm108_vm2  ;;  %vm117_vm6 = vweird.f32 %v100_v29 }
 0x10d   :  { %v103_v31 = vmul.f32 %v596_v28, %v102_v30 }
 0x10f   :  { %v104_v32 = vmul.f32 0.5, %v103_v31 }
 0x111   :  { %v105_v34 = vsub.f32 1.5, %v104_v32 }
 0x112   :  { %v598_v33 = vpop.eup %597 }
 0x113   :  { %v112_v35 = vmul.f32 %v598_v33, %v100_v29  ;;  %v106_v37 = vmul.f32 %v596_v28, %v105_v34  ;;  %vm118_vm4 = vweird.f32 %v598_v33 }
 0x114   :  { %vm119_vm7 = vmor %vm117_vm6, %vm118_vm4 }
 0x115   :  { %v113_v36 = vmul.f32 %v598_v33, %v112_v35  ;;  %v110_v41 = vsel %vm109_vm5, %v596_v28, %v106_v37 }
 0x116   :  { %v121_v43 = vmul.f32 %v110_v41, %v87_v13 }
 0x117   :  { %v114_v38 = vmul.f32 0.5, %v113_v36 }
 0x119   :  { %v115_v39 = vsub.f32 1.5, %v114_v38 }
 0x11b   :  { %v116_v40 = vmul.f32 %v598_v33, %v115_v39 }
 0x11d   :  { %v120_v42 = vsel %vm119_vm7, %v598_v33, %v116_v40 }
 0x11e   :  { %v122_v44 = vmul.f32 %v120_v42, %v88_v18 }
 0x120   :  { %v123_v45 = vpack.c.bf16 %v122_v44, %v121_v43 }
 0x122   :  { %552 = vmatmul.msk.bf16.vlgmr.msra.gmra.mxu0 %vm71_vm0, %v123_v45 }
 0x19f   :  { %v152_v47 = vpop.f32.mrf.mxu0 }
 0x1a0   :  { %v161_v48 = vadd.f32 %v591_v46, %v152_v47  ;;  %177 = vrot.lane.b32.xlu2 %v152_v47, %s725_s11  ;;  %v183_v53 = vpack.c.bf16 %v152_v47, %v152_v47 }
 0x1a2   :  { %165 = vrot.lane.b32.xlu1 %v161_v48, %s725_s11  ;;  %v188_v56 = vunpack.c.l.b16 %v183_v53  ;;  %v171_v14 = vpack.c.bf16 %v161_v48, %v161_v48 }
 0x1a4   :  { %v189_v60 = vpack.c.b16 %v188_v56, %v188_v56 }
 0x1a7   :  { %v154_v49 = vpop.f32.mrf.mxu0 }
 0x1a8   :  { %179 = vrot.lane.b32.xlu2 %v154_v49, %s725_s11  ;;  %v162_v61 = vadd.f32 %v591_v46, %v154_v49  ;;  %v184_v62 = vpack.c.bf16 %v154_v49, %v154_v49 }
 0x1aa   :  { %v213_v63 = vunpack.c.l.b16 %v184_v62  ;;  %v172_v11 = vpack.c.bf16 %v162_v61, %v162_v61 }
 0x1ac   :  { %v786_v0 = vpack.c.b16 %v213_v63, %v213_v63 }
 0x1fa   :  { %v178_v50 = vpop.permute.xlu2 %177 }
 0x1fb   :  { %v185_v51 = vpack.c.bf16 %v178_v50, %v178_v50 }
 0x1fd   :  { %v237_v52 = vunpack.c.l.b16 %v185_v51 }
 0x1ff   :  { %v238_v54 = vpack.c.b16 %v237_v52, %v237_v52 }
 0x201   :  { %239 = vrot.lane.b32.xlu0 %v238_v54, %s726_s12 }
 0x202   :  { %v180_v55 = vpop.permute.xlu2 %179 }
 0x203   :  { %v186_v57 = vpack.c.bf16 %v180_v55, %v180_v55 }
 0x205   :  { %v261_v58 = vunpack.c.l.b16 %v186_v57 }
 0x207   :  { %v783_v59 = vpack.c.b16 %v261_v58, %v261_v58 }
 0x209   :  { %190 = vrot.lane.b32.xlu0 %v189_v60, %s726_s12  ;;  %263 = vrot.lane.b32.xlu2 %v783_v59, %s726_s12 }
 0x211   :  { %167 = vrot.lane.b32.xlu2 %v162_v61, %s725_s11 }
 0x214   :  { %v166_v9 = vpop.permute.xlu1 %165 }
 0x215   :  { %v173_v10 = vpack.c.bf16 %v166_v9, %v166_v9 }
 0x219   :  { %215 = vrot.lane.b32.xlu2 %v786_v0, %s726_s12 }
 0x263   :  { %v264_v1 = vpop.permute.xlu2 %263 }
 0x264   :  { %v269_v2 = vsel %vm192_vm8, %v264_v1, 0 }
 0x265   :  { %278 = vmatpush.bf16.xpose.msrb.mxu0 %v269_v2 }
 0x26b   :  { %v168_v3 = vpop.permute.xlu2 %167 }
 0x26c   :  { %v174_v4 = vpack.c.bf16 %v168_v3, %v168_v3 }
 0x26e   :  { %556 = vmatmul.msk.bf16.vlgmr.msrb.gmra.mxu0 %vm192_vm8, %v174_v4 }
 0x273   :  { %v240_v5 = vpop.permute.xlu0 %239  ;;  %v216_v6 = vpop.permute.xlu2 %215 }
 0x274   :  { %v221_v7 = vsel %vm192_vm8, %v216_v6, 0  ;;  %v245_v8 = vsel %vm192_vm8, %v240_v5, 0 }
 0x275   :  { %230 = vmatpush.bf16.xpose.msra.mxu2 %v221_v7  ;;  %254 = vmatpush.bf16.xpose.msra.mxu3 %v245_v8 }
 0x27b   :  { %v191_v12 = vpop.permute.xlu0 %190 }
 0x27c   :  { %554 = vmatmul.msk.bf16.vlgmr.msra.gmra.mxu2 %vm192_vm8, %v172_v11  ;;  %555 = vmatmul.msk.bf16.vlgmr.msra.gmra.mxu3 %vm192_vm8, %v173_v10  ;;  %v197_v13 = vsel %vm192_vm8, %v191_v12, 0 }
 0x27d   :  { %206 = vmatpush.bf16.xpose.msra.mxu1 %v197_v13 }
 0x284   :  { %553 = vmatmul.msk.bf16.vlgmr.msra.gmra.mxu1 %vm192_vm8, %v171_v14 }
 0x2eb   :  { %v280_v15 = vpop.f32.mrf.mxu0 }
 0x2ec   :  { %v287_v16 = vmul.f32 0.25, %v280_v15 }
 0x2ee   :  { %v298_v17 = vsel %vm288_vm9, %v287_v16, -inf }
 0x2ef   :  { %299 = vmax.xlane.f32.xlu1 %v298_v17 }
 0x2f3   :  { %v282_v18 = vpop.f32.mrf.mxu0 }
 0x2ff   :  { %v232_v19 = vpop.f32.mrf.mxu2  ;;  %v256_v20 = vpop.f32.mrf.mxu3 }
 0x300   :  { %v285_v21 = vmul.f32 0.25, %v232_v19  ;;  %v286_v22 = vmul.f32 0.25, %v256_v20 }
 0x301   :  { %v208_v23 = vpop.f32.mrf.mxu1 }
 0x302   :  { %v295_v24 = vsel %vm288_vm9, %v286_v22, -inf  ;;  %v292_v25 = vsel %vm288_vm9, %v285_v21, -inf  ;;  %v284_v26 = vmul.f32 0.25, %v208_v23 }
 0x303   :  { %296 = vmax.xlane.f32.xlu2 %v295_v24  ;;  %293 = vmax.xlane.f32.xlu0 %v292_v25 }
 0x304   :  { %v289_v30 = vsel %vm288_vm9, %v284_v26, -inf }
 0x307   :  { %v234_v27 = vpop.f32.mrf.mxu2  ;;  %v258_v28 = vpop.f32.mrf.mxu3 }
 0x309   :  { %v210_v29 = vpop.f32.mrf.mxu1 }
 0x30b   :  { %290 = vmax.xlane.f32.xlu2 %v289_v30 }
 0x323   :  { %432 = vrot.lane.b32.xlu2 %v238_v54, %s718_s26 }
 0x32b   :  { %389 = vrot.lane.b32.xlu2 %v189_v60, %s718_s26 }
 0x362   :  { %v300_v31 = vpop.xlane.xlu1 %299 }
 0x363   :  { %v304_v32 = vsub.f32 %v287_v16, %v300_v31 }
 0x365   :  { %v311_v33 = vmul.f32 1.442695, %v304_v32 }
 0x367   :  { %599 = vpow2.f32 %v311_v33 }
 0x36d   :  { %v803_v34 = vpop.eup %599 }
 0x36e   :  { %v322_v35 = vsel %vm288_vm9, %v803_v34, 0.0 }
 0x36f   :  { %323 = vadd.xlane.f32.xlu0 %v322_v35 }
 0x376   :  { %v297_v36 = vpop.xlane.xlu2 %296  ;;  %v294_v37 = vpop.xlane.xlu0 %293 }
 0x377   :  { %v303_v38 = vsub.f32 %v286_v22, %v297_v36  ;;  %v302_v39 = vsub.f32 %v285_v21, %v294_v37 }
 0x379   :  { %v309_v40 = vmul.f32 1.442695, %v303_v38  ;;  %v307_v41 = vmul.f32 1.442695, %v302_v39 }
 0x37b   :  { %601 = vpow2.f32 %v309_v40 }
 0x37c   :  { %603 = vpow2.f32 %v307_v41 }
 0x37e   :  { %v291_v42 = vpop.xlane.xlu2 %290 }
 0x37f   :  { %v301_v43 = vsub.f32 %v284_v26, %v291_v42 }
 0x381   :  { %v807_v44 = vpop.eup %601  ;;  %v305_v45 = vmul.f32 1.442695, %v301_v43 }
 0x382   :  { %v809_v46 = vpop.eup %603  ;;  %v319_v47 = vsel %vm288_vm9, %v807_v44, 0.0 }
 0x383   :  { %605 = vpow2.f32 %v305_v45  ;;  %320 = vadd.xlane.f32.xlu1 %v319_v47  ;;  %v316_v48 = vsel %vm288_vm9, %v809_v46, 0.0 }
 0x384   :  { %317 = vadd.xlane.f32.xlu0 %v316_v48 }
 0x386   :  { %v433_v49 = vpop.permute.xlu2 %432 }
 0x387   :  { %v438_v50 = vsel %vm394_vm10, %v433_v49, 0 }
 0x388   :  { %447 = vmatpush.bf16.msrb.mxu3 %v438_v50  ;;  %v573_v50 = vld [vmem:[#allocation7 + $0x8] sm:$0xff] }
 0x389   :  { %v816_v51 = vpop.eup %605 }
 0x38a   :  { %v313_v52 = vsel %vm288_vm9, %v816_v51, 0.0 }
 0x38c   :  { %314 = vadd.xlane.f32.xlu0 %v313_v52 }
 0x38e   :  { %v390_v53 = vpop.permute.xlu2 %389 }
 0x38f   :  { %v396_v54 = vsel %vm394_vm10, %v390_v53, 0 }
 0x390   :  { %405 = vmatpush.bf16.msrb.mxu1 %v396_v54 }
 0x394   :  { %514 = vmatpush.bf16.msra.mxu1 %v573_v50 }
 0x39c   :  { %453 = vrot.lane.b32.xlu1 %v783_v59, %s718_s26 }
 0x3a0   :  { %411 = vrot.lane.b32.xlu0 %v786_v0, %s718_s26 }
 0x3e2   :  { %v324_v55 = vpop.xlane.xlu0 %323 }
 0x3e3   :  { %607 = vrcp.f32 %v324_v55  ;;  %vm375_vm13 = vweird.f32 %v324_v55  ;;  %v381_v11 = vand.u32 2147483648, %v324_v55  ;;  %v379_v13 = vand.u32 2147483647, %v324_v55 }
 0x3e5   :  { %v382_v21 = vor.u32 1.1754944e-38, %v381_v11  ;;  %vm380_vm4 = vcmp.eq.f32.partialorder %v379_v13, 8.507059e+37 }
 0x3e9   :  { %v608_v56 = vpop.eup %607 }
 0x3ea   :  { %v371_v57 = vmul.f32 %v608_v56, %v324_v55  ;;  %vm376_vm11 = vweird.f32 %v608_v56 }
 0x3eb   :  { %vm825_vm14 = vmor %vm375_vm13, %vm376_vm11 }
 0x3ec   :  { %v372_v61 = vsub.f32 1.0, %v371_v57 }
 0x3ee   :  { %v373_v1 = vmul.f32 %v608_v56, %v372_v61 }
 0x3f0   :  { %v374_v6 = vadd.f32 %v608_v56, %v373_v1 }
 0x3f2   :  { %v378_v16 = vsel %vm825_vm14, %v608_v56, %v374_v6 }
 0x3f3   :  { %v383_v26 = vsel %vm380_vm4, %v382_v21, %v378_v16 }
 0x3f4   :  { %v384_v35 = vmul.f32 %v803_v34, %v383_v26 }
 0x3f6   :  { %v321_v58 = vpop.xlane.xlu1 %320  ;;  %v388_v43 = vpack.c.bf16 %v384_v35, %v384_v35 }
 0x3f7   :  { %609 = vrcp.f32 %v321_v58  ;;  %v318_v60 = vpop.xlane.xlu0 %317  ;;  %v366_v59 = vand.u32 2147483648, %v321_v58  ;;  %v364_v8 = vand.u32 2147483647, %v321_v58  ;;  %vm360_vm15 = vweird.f32 %v321_v58 }
 0x3f8   :  { %611 = vrcp.f32 %v318_v60  ;;  %v351_v22 = vand.u32 2147483648, %v318_v60  ;;  %vm345_vm5 = vweird.f32 %v318_v60  ;;  %v349_v24 = vand.u32 2147483647, %v318_v60 }
 0x3f9   :  { %v367_v14 = vor.u32 1.1754944e-38, %v366_v59  ;;  %vm365_vm2 = vcmp.eq.f32.partialorder %v364_v8, 8.507059e+37 }
 0x3fa   :  { %v352_v33 = vor.u32 1.1754944e-38, %v351_v22  ;;  %vm350_vm11 = vcmp.eq.f32.partialorder %v349_v24, 8.507059e+37 }
 0x3fd   :  { %v610_v62 = vpop.eup %609 }
 0x3fe   :  { %v612_v63 = vpop.eup %611  ;;  %v356_v2 = vmul.f32 %v610_v62, %v321_v58  ;;  %vm361_vm12 = vweird.f32 %v610_v62 }
 0x3ff   :  { %v341_v3 = vmul.f32 %v612_v63, %v318_v60  ;;  %v315_v4 = vpop.xlane.xlu0 %314  ;;  %vm362_vm1 = vmor %vm360_vm15, %vm361_vm12  ;;  %vm346_vm3 = vweird.f32 %v612_v63  ;;  %v572_v60 = vld [vmem:[#allocation7] sm:$0xff] }
 0x400   :  { %v357_v5 = vsub.f32 1.0, %v356_v2  ;;  %613 = vrcp.f32 %v315_v4  ;;  %vm832_vm6 = vmor %vm345_vm5, %vm346_vm3  ;;  %v336_v28 = vand.u32 2147483648, %v315_v4  ;;  %v334_v31 = vand.u32 2147483647, %v315_v4  ;;  %515 = vmatpush.bf16.msra.mxu1 %v572_v60 }
 0x401   :  { %v342_v0 = vsub.f32 1.0, %v341_v3  ;;  %vm330_vm12 = vweird.f32 %v315_v4 }
 0x402   :  { %v358_v7 = vmul.f32 %v610_v62, %v357_v5  ;;  %v337_v37 = vor.u32 1.1754944e-38, %v336_v28  ;;  %vm335_vm14 = vcmp.eq.f32.partialorder %v334_v31, 8.507059e+37 }
 0x403   :  { %v343_v9 = vmul.f32 %v612_v63, %v342_v0 }
 0x404   :  { %v359_v12 = vadd.f32 %v610_v62, %v358_v7 }
 0x405   :  { %v344_v18 = vadd.f32 %v612_v63, %v343_v9 }
 0x406   :  { %v614_v15 = vpop.eup %613  ;;  %v363_v17 = vsel %vm362_vm1, %v610_v62, %v359_v12 }
 0x407   :  { %v326_v19 = vmul.f32 %v614_v15, %v315_v4  ;;  %v368_v20 = vsel %vm365_vm2, %v367_v14, %v363_v17  ;;  %vm331_vm7 = vweird.f32 %v614_v15  ;;  %v348_v32 = vsel %vm832_vm6, %v612_v63, %v344_v18  ;;  %v592_v4 = vld [vmem:[%s865_s4] ss:$0 sm:$0xff] }
 0x408   :  { %v369_v23 = vmul.f32 %v807_v44, %v368_v20  ;;  %vm332_vm13 = vmor %vm330_vm12, %vm331_vm7  ;;  %v353_v39 = vsel %vm350_vm11, %v352_v33, %v348_v32 }
 0x409   :  { %v327_v25 = vsub.f32 1.0, %v326_v19  ;;  %v354_v45 = vmul.f32 %v809_v46, %v353_v39 }
 0x40a   :  { %v387_v29 = vpack.c.bf16 %v369_v23, %v369_v23 }
 0x40b   :  { %v328_v30 = vmul.f32 %v614_v15, %v327_v25  ;;  %v386_v49 = vpack.c.bf16 %v354_v45, %v354_v45 }
 0x40c   :  { %559 = vmatmul.msk.bf16.vlgmr.msrb.gmra.mxu3 %vm288_vm9, %v387_v29 }
 0x40d   :  { %v329_v36 = vadd.f32 %v614_v15, %v328_v30 }
 0x40e   :  { %v454_v38 = vpop.permute.xlu1 %453 }
 0x40f   :  { %v459_v40 = vsel %vm394_vm10, %v454_v38, 0  ;;  %v333_v41 = vsel %vm332_vm13, %v614_v15, %v329_v36 }
 0x410   :  { %468 = vmatpush.bf16.msra.mxu0 %v459_v40  ;;  %v338_v42 = vsel %vm335_vm14, %v337_v37, %v333_v41 }
 0x411   :  { %v339_v44 = vmul.f32 %v816_v51, %v338_v42 }
 0x412   :  { %v412_v47 = vpop.permute.xlu0 %411 }
 0x413   :  { %v417_v34 = vsel %vm394_vm10, %v412_v47, 0  ;;  %560 = vmatmul.msk.bf16.vlgmr.msra.gmra.mxu0 %vm288_vm9, %v388_v43  ;;  %v385_v48 = vpack.c.bf16 %v339_v44, %v339_v44 }
 0x414   :  { %426 = vmatpush.bf16.msrb.mxu2 %v417_v34 }
 0x415   :  { %557 = vmatmul.msk.bf16.vlgmr.msrb.gmra.mxu1 %vm288_vm9, %v385_v48 }
 0x417   :  { %558 = vmatmul.msk.bf16.vlgmr.msrb.gmra.mxu2 %vm288_vm9, %v386_v49 }
 0x48f   :  { %v449_v52 = vpop.f32.mrf.mxu3 }
 0x490   :  { %v470_v53 = vpop.f32.mrf.mxu0 }
 0x491   :  { %v586_v54 = vpack.i.bf16 %v470_v53, %v449_v52 }
 0x492   :  { %v407_v51 = vpop.f32.mrf.mxu1 }
 0x493   :  { %587 = vrot.lane.b32.xlu1 %v586_v54, %s727_s2 }
 0x497   :  { %v451_v46 = vpop.f32.mrf.mxu3 }
 0x498   :  { %v472_v55 = vpop.f32.mrf.mxu0 }
 0x49a   :  { %v409_v56 = vpop.f32.mrf.mxu1  ;;  %v428_v57 = vpop.f32.mrf.mxu2 }
 0x4a2   :  { %v430_v58 = vpop.f32.mrf.mxu2 }
 0x505   :  { %v588_v61 = vpop.permute.xlu1 %587 }
 0x506   :  { %v590_v62 = vunpack.i.h.bf16 %v588_v61  ;;  %v589_v63 = vunpack.i.l.bf16 %v588_v61 }
 0x508   :  { %v482_v1 = vsel %vm192_vm8, %v407_v51, %v589_v63  ;;  %v483_v2 = vsel %vm192_vm8, %v428_v57, %v590_v62 }
 0x509   :  { %v484_v3 = vpack.c.bf16 %v483_v2, %v482_v1 }
 0x50b   :  { %569 = vmatmul.msk.bf16.vlgmr.msra.gmra.mxu1 %vm71_vm0, %v484_v3 }
 0x588   :  { %v517_v5 = vpop.f32.mrf.mxu1 }
 0x589   :  { %v518_v59 = vadd.f32 %v592_v4, %v517_v5 }
 0x58b   :  { %522 = vst.msk [vmem:[#allocation8] sm:$0xff] %vm71_vm0, %v518_v59 }
 0x590   :  { %v519_v0 = vpop.f32.mrf.mxu1 }
 0x591   :  { %v520_v6 = vadd.f32 %v592_v4, %v519_v0 }
 0x593   :  { %523 = vst.msk [vmem:[#allocation8 + $0x8] sm:$0xff] %vm71_vm0, %v520_v6 }
 0x594   :  { %536 = dma.vmem_to_hbm [thread:$0]  %s529_s16, 256, %s531_s19, [#allocation4], %s721_s30, %s721_s30, %s722_s1  }
 0x595   :  { %715 = dma.done.wait [#allocation4], 256  }
 0x596   :  { %716 = vsyncadd [#allocation4], 4294967040 }
 0x597   :  { %541 = vsyncpa [#allocation3], 1 }
 0x598   :  { %542 = vsyncpa [#allocation6], 1 }
 0x599   :  { %543 = vsyncpa [#allocation4], 1 }

</bundles_post_ra>
